<compile_context>
chip_gen: v7x
topology: tpu7x:2x2x1
jax: 0.10.0
libtpu: 0.0.40
codegen_flags: <defaults>
</compile_context>

<pallas_src>
import jax
import jax.numpy as jnp
from jax.experimental import pallas as pl
from jax.experimental.pallas import tpu as pltpu


def _attention_pool_kernel(batch_ref, x_ref, q_ref, o_ref, m_scr, l_scr, acc_scr):
    """One (graph-tile, node-tile) step of fused attention pooling.

    batch_ref : (1, TN) int32  graph id of every node in this node tile (-1 = pad)
    x_ref     : (TN, C) f32    node features for this node tile
    q_ref     : (1, C)  f32    attention query
    o_ref     : (TB, C) f32    pooled per-graph output (stored on last node tile)
    m_scr     : (TB, 1) f32    running per-graph max   (online softmax)
    l_scr     : (TB, 1) f32    running per-graph sum of exp
    acc_scr   : (TB, C) f32    running per-graph weighted-feature accumulator
    """
    bi = pl.program_id(0)          # graph-tile index ("parallel")
    ni = pl.program_id(1)          # node-tile index  ("arbitrary" reduction)

    @pl.when(ni == 0)
    def _init():
        m_scr[...] = jnp.full(m_scr.shape, -1e30, dtype=jnp.float32)
        l_scr[...] = jnp.zeros(l_scr.shape, dtype=jnp.float32)
        acc_scr[...] = jnp.zeros(acc_scr.shape, dtype=jnp.float32)

    x = x_ref[...]                                    # (TN, C)
    q = q_ref[...]                                    # (1, C)
    ids = batch_ref[...]                              # (1, TN) int32

    tb = m_scr.shape[0]
    tn = x.shape[0]

    # In-kernel one-hot membership, graph-major & lane-dense: row r of this tile
    # owns node n iff batch[n] == bi*TB + r.
    row_ids = bi * tb + jax.lax.broadcasted_iota(jnp.int32, (tb, tn), 0)
    mem = row_ids == ids                              # (TB, TN) bool

    # Per-node attention scores laid out along lanes.
    scores = jnp.sum(x * q, axis=-1)[None, :]         # (1, TN)
    s = jnp.where(mem, scores, -1e30)                 # (TB, TN)

    # Online (flash-style) segment softmax accumulation across node tiles.
    tile_max = jnp.max(s, axis=1, keepdims=True)      # (TB, 1)
    new_max = jnp.maximum(m_scr[...], tile_max)
    alpha = jnp.exp(m_scr[...] - new_max)             # rescale of previous tiles
    p = jnp.where(mem, jnp.exp(s - new_max), 0.0)     # (TB, TN) unnormalized weights
    l_scr[...] = alpha * l_scr[...] + jnp.sum(p, axis=1, keepdims=True)
    # Weighted per-graph sum: weights folded into the membership matrix, bf16 MXU matmul.
    acc_scr[...] = alpha * acc_scr[...] + jnp.dot(
        p.astype(jnp.bfloat16), x.astype(jnp.bfloat16),
        preferred_element_type=jnp.float32)
    m_scr[...] = new_max

    @pl.when(ni == pl.num_programs(1) - 1)
    def _finalize():
        inv = pl.reciprocal(jnp.maximum(l_scr[...], 1e-30), approx=True)
        o_ref[...] = (acc_scr[...] * inv).astype(o_ref.dtype)


def attention_pooling(x, batch, query, num_graphs, node_tile=8):
    """x: (N, C) f32, batch: (N,) int graph ids, query: (C,) f32 -> (B, C) f32."""
    N, C = x.shape
    B = int(num_graphs)
    tn = int(node_tile)
    tb = B  # TODO(synk): at real sizes tile B (multiple of 8) and keep C a multiple of 128
    num_b_tiles = -(-B // tb)
    num_n_tiles = -(-N // tn)
    n_pad = num_n_tiles * tn

    # Pad nodes to a whole number of tiles; padded nodes get id -1 (match nothing).
    x_p = jnp.zeros((n_pad, C), jnp.float32).at[:N].set(x.astype(jnp.float32))
    batch_p = jnp.full((n_pad,), -1, jnp.int32).at[:N].set(batch.astype(jnp.int32))
    batch3d = batch_p.reshape(num_n_tiles, 1, tn)
    q = query.reshape(1, C).astype(jnp.float32)

    return pl.pallas_call(
        _attention_pool_kernel,
        out_shape=jax.ShapeDtypeStruct((B, C), jnp.float32),
        grid=(num_b_tiles, num_n_tiles),
        in_specs=[
            pl.BlockSpec((None, 1, tn), lambda bi, ni: (ni, 0, 0)),   # batch ids (node tile)
            pl.BlockSpec((tn, C), lambda bi, ni: (ni, 0)),            # x (node tile)
            pl.BlockSpec((1, C), lambda bi, ni: (0, 0)),              # query
        ],
        out_specs=pl.BlockSpec((tb, C), lambda bi, ni: (bi, 0)),
        scratch_shapes=[
            pltpu.VMEM((tb, 1), jnp.float32),   # running max
            pltpu.VMEM((tb, 1), jnp.float32),   # running sum of exp
            pltpu.VMEM((tb, C), jnp.float32),   # weighted-feature accumulator
        ],
        compiler_params=pltpu.CompilerParams(
            dimension_semantics=("parallel", "arbitrary")),
    )(batch3d, x_p, q)


if __name__ == "__main__":
    HIDDEN = 32
    N_NODES, N_GRAPHS = 16, 2   # 8 nodes per graph -> 2 node tiles of 8

    key = jax.random.PRNGKey(0)
    k_x, k_q = jax.random.split(key)
    x = jax.random.normal(k_x, (N_NODES, HIDDEN), dtype=jnp.float32)
    query = (0.02 * jax.random.normal(k_q, (HIDDEN,))).astype(jnp.float32)
    batch = jnp.concatenate([jnp.zeros(8, jnp.int32), jnp.ones(8, jnp.int32)])

    fn = jax.jit(attention_pooling, static_argnums=(3, 4))
    out = jax.block_until_ready(fn(x, batch, query, N_GRAPHS, 8))

    # Pure-JAX reference of the PyTorch forward (segment softmax + per-graph weighted sum).
    scores = (x * query).sum(-1)
    ref_rows = []
    for b in range(N_GRAPHS):
        mask = batch == b
        s = jnp.where(mask, scores, -jnp.inf)
        w = jax.nn.softmax(s)
        ref_rows.append((w[:, None] * x * mask[:, None].astype(x.dtype)).sum(0))
    ref = jnp.stack(ref_rows, axis=0)

    assert out.shape == (N_GRAPHS, HIDDEN)
    assert bool(jnp.all(jnp.isfinite(out)))
    # bf16 MXU operands (f32 accumulation) -> slightly looser tolerance than pure f32
    assert bool(jnp.allclose(out, ref, rtol=2e-2, atol=2e-2)), float(jnp.max(jnp.abs(out - ref)))
    print("KERNEL_OK")
</pallas_src>

<mosaic_0001>
module attributes {stable_mosaic.version = 11 : i64} {
  func.func @_attention_pool_kernel(%arg0: i32, %arg1: i32, %arg2: memref<1x1x8xi32, #tpu.memory_space<vmem>>, %arg3: memref<8x32xf32, #tpu.memory_space<vmem>>, %arg4: memref<1x32xf32, #tpu.memory_space<vmem>>, %arg5: memref<2x32xf32, #tpu.memory_space<vmem>>, %arg6: memref<2x1xf32, #tpu.memory_space<vmem>>, %arg7: memref<2x1xf32, #tpu.memory_space<vmem>>, %arg8: memref<2x32xf32, #tpu.memory_space<vmem>>) attributes {dimension_semantics = [#tpu.dimension_semantics<parallel>, #tpu.dimension_semantics<arbitrary>], iteration_bounds = array<i64: 1, 2>, scalar_prefetch = 0 : i64, scratch_operands = 3 : i64, tpu.core_type = #tpu.core_type<tc>, window_params = [{transform_indices = @transform_0, window_bounds = array<i64: 1, 1, 8>}, {transform_indices = @transform_1, window_bounds = array<i64: 8, 32>}, {pipeline_mode = #tpu.pipeline_mode<synchronous>, transform_indices = @transform_2, window_bounds = array<i64: 1, 32>}, {transform_indices = @transform_3, window_bounds = array<i64: 2, 32>}]} {
    %c0_i32 = arith.constant 0 : i32
    %0 = arith.cmpi eq, %arg1, %c0_i32 : i32
    %1 = arith.extui %0 : i1 to i32
    %c0_i32_0 = arith.constant 0 : i32
    %2 = arith.cmpi ne, %1, %c0_i32_0 : i32
    scf.if %2 {
      %cst_27 = arith.constant -1.000000e+30 : f32
      %51 = vector.broadcast %cst_27 : f32 to vector<2x1xf32>
      %c0_28 = arith.constant 0 : index
      %c0_29 = arith.constant 0 : index
      %52 = vector.load %arg6[%c0_28, %c0_29] : memref<2x1xf32, #tpu.memory_space<vmem>>, vector<2x1xf32>
      tpu.vector_store %arg6[%c0_28, %c0_29], %51 {strides = array<i32>} : memref<2x1xf32, #tpu.memory_space<vmem>>, vector<2x1xf32>,
      %cst_30 = arith.constant 0.000000e+00 : f32
      %53 = vector.broadcast %cst_30 : f32 to vector<2x1xf32>
      %c0_31 = arith.constant 0 : index
      %c0_32 = arith.constant 0 : index
      %54 = vector.load %arg7[%c0_31, %c0_32] : memref<2x1xf32, #tpu.memory_space<vmem>>, vector<2x1xf32>
      tpu.vector_store %arg7[%c0_31, %c0_32], %53 {strides = array<i32>} : memref<2x1xf32, #tpu.memory_space<vmem>>, vector<2x1xf32>,
      %cst_33 = arith.constant 0.000000e+00 : f32
      %55 = vector.broadcast %cst_33 : f32 to vector<2x32xf32>
      %c0_34 = arith.constant 0 : index
      %c0_35 = arith.constant 0 : index
      %56 = vector.load %arg8[%c0_34, %c0_35] : memref<2x32xf32, #tpu.memory_space<vmem>>, vector<2x32xf32>
      tpu.vector_store %arg8[%c0_34, %c0_35], %55 {strides = array<i32>} : memref<2x32xf32, #tpu.memory_space<vmem>>, vector<2x32xf32>,
    } else {
    }
    %c0 = arith.constant 0 : index
    %c0_1 = arith.constant 0 : index
    %3 = vector.load %arg3[%c0, %c0_1] : memref<8x32xf32, #tpu.memory_space<vmem>>, vector<8x32xf32>
    %c0_2 = arith.constant 0 : index
    %c0_3 = arith.constant 0 : index
    %4 = vector.load %arg4[%c0_2, %c0_3] : memref<1x32xf32, #tpu.memory_space<vmem>>, vector<1x32xf32>
    %c0_4 = arith.constant 0 : index
    %c0_5 = arith.constant 0 : index
    %c0_6 = arith.constant 0 : index
    %5 = vector.load %arg2[%c0_4, %c0_5, %c0_6] : memref<1x1x8xi32, #tpu.memory_space<vmem>>, vector<1x1x8xi32>
    %6 = vector.shape_cast %5 : vector<1x1x8xi32> to vector<1x8xi32>
    %c2_i32 = arith.constant 2 : i32
    %7 = arith.muli %arg0, %c2_i32 : i32
    %8 = tpu.iota {dimensions = array<i32: 0>} : vector<2x8xi32>
    %9 = vector.broadcast %7 : i32 to vector<2x8xi32>
    %10 = arith.addi %9, %8 : vector<2x8xi32>
    %11 = vector.broadcast %6 : vector<1x8xi32> to vector<2x8xi32>
    %12 = arith.cmpi eq, %10, %11 : vector<2x8xi32>
    %13 = vector.broadcast %4 : vector<1x32xf32> to vector<8x32xf32>
    %14 = arith.mulf %3, %13 : vector<8x32xf32>
    %cst = arith.constant dense<0.000000e+00> : vector<8xf32>
    %15 = vector.multi_reduction <add>, %14, %cst [1] : vector<8x32xf32> to vector<8xf32>
    %16 = vector.shape_cast %15 : vector<8xf32> to vector<1x8xf32>
    %cst_7 = arith.constant -1.000000e+30 : f32
    %17 = vector.shape_cast %16 : vector<1x8xf32> to vector<1x8xf32>
    %18 = vector.broadcast %17 : vector<1x8xf32> to vector<2x8xf32>
    %19 = vector.broadcast %cst_7 : f32 to vector<2x8xf32>
    %20 = arith.select %12, %18, %19 : vector<2x8xi1>, vector<2x8xf32>
    %cst_8 = arith.constant dense<0xFF800000> : vector<2xf32>
    %21 = vector.multi_reduction <maximumf>, %20, %cst_8 [1] : vector<2x8xf32> to vector<2xf32>
    %22 = vector.shape_cast %21 : vector<2xf32> to vector<2x1xf32>
    %c0_9 = arith.constant 0 : index
    %c0_10 = arith.constant 0 : index
    %23 = vector.load %arg6[%c0_9, %c0_10] : memref<2x1xf32, #tpu.memory_space<vmem>>, vector<2x1xf32>
    %24 = arith.maximumf %23, %22 : vector<2x1xf32>
    %c0_11 = arith.constant 0 : index
    %c0_12 = arith.constant 0 : index
    %25 = vector.load %arg6[%c0_11, %c0_12] : memref<2x1xf32, #tpu.memory_space<vmem>>, vector<2x1xf32>
    %26 = arith.subf %25, %24 : vector<2x1xf32>
    %27 = math.exp %26 : vector<2x1xf32>
    %28 = vector.broadcast %24 : vector<2x1xf32> to vector<2x8xf32>
    %29 = arith.subf %20, %28 : vector<2x8xf32>
    %30 = math.exp %29 : vector<2x8xf32>
    %cst_13 = arith.constant 0.000000e+00 : f32
    %31 = vector.broadcast %cst_13 : f32 to vector<2x8xf32>
    %32 = arith.select %12, %30, %31 : vector<2x8xi1>, vector<2x8xf32>
    %c0_14 = arith.constant 0 : index
    %c0_15 = arith.constant 0 : index
    %33 = vector.load %arg7[%c0_14, %c0_15] : memref<2x1xf32, #tpu.memory_space<vmem>>, vector<2x1xf32>
    %34 = arith.mulf %27, %33 : vector<2x1xf32>
    %cst_16 = arith.constant dense<0.000000e+00> : vector<2xf32>
    %35 = vector.multi_reduction <add>, %32, %cst_16 [1] : vector<2x8xf32> to vector<2xf32>
    %36 = vector.shape_cast %35 : vector<2xf32> to vector<2x1xf32>
    %37 = arith.addf %34, %36 : vector<2x1xf32>
    %c0_17 = arith.constant 0 : index
    %c0_18 = arith.constant 0 : index
    %38 = vector.load %arg7[%c0_17, %c0_18] : memref<2x1xf32, #tpu.memory_space<vmem>>, vector<2x1xf32>
    tpu.vector_store %arg7[%c0_17, %c0_18], %37 {strides = array<i32>} : memref<2x1xf32, #tpu.memory_space<vmem>>, vector<2x1xf32>,
    %c0_19 = arith.constant 0 : index
    %c0_20 = arith.constant 0 : index
    %39 = vector.load %arg8[%c0_19, %c0_20] : memref<2x32xf32, #tpu.memory_space<vmem>>, vector<2x32xf32>
    %40 = vector.broadcast %27 : vector<2x1xf32> to vector<2x32xf32>
    %41 = arith.mulf %40, %39 : vector<2x32xf32>
    %42 = arith.truncf %32 : vector<2x8xf32> to vector<2x8xbf16>
    %43 = arith.truncf %3 : vector<8x32xf32> to vector<8x32xbf16>
    %cst_21 = arith.constant dense<0.000000e+00> : vector<2x32xf32>
    %44 = tpu.matmul %42, %43, %cst_21 {dimension_numbers = #tpu.dot_dimension_numbers<[1], [0], [0], [1], [0, 0, 1, 1], [], []>} : vector<2x8xbf16>, vector<8x32xbf16>, vector<2x32xf32> -> vector<2x32xf32>
    %45 = arith.addf %41, %44 : vector<2x32xf32>
    %c0_22 = arith.constant 0 : index
    %c0_23 = arith.constant 0 : index
    %46 = vector.load %arg8[%c0_22, %c0_23] : memref<2x32xf32, #tpu.memory_space<vmem>>, vector<2x32xf32>
    tpu.vector_store %arg8[%c0_22, %c0_23], %45 {strides = array<i32>} : memref<2x32xf32, #tpu.memory_space<vmem>>, vector<2x32xf32>,
    %c0_24 = arith.constant 0 : index
    %c0_25 = arith.constant 0 : index
    %47 = vector.load %arg6[%c0_24, %c0_25] : memref<2x1xf32, #tpu.memory_space<vmem>>, vector<2x1xf32>
    tpu.vector_store %arg6[%c0_24, %c0_25], %24 {strides = array<i32>} : memref<2x1xf32, #tpu.memory_space<vmem>>, vector<2x1xf32>,
    %c1_i32 = arith.constant 1 : i32
    %48 = arith.cmpi eq, %arg1, %c1_i32 : i32
    %49 = arith.extui %48 : i1 to i32
    %c0_i32_26 = arith.constant 0 : i32
    %50 = arith.cmpi ne, %49, %c0_i32_26 : i32
    scf.if %50 {
      %c0_27 = arith.constant 0 : index
      %c0_28 = arith.constant 0 : index
      %51 = vector.load %arg7[%c0_27, %c0_28] : memref<2x1xf32, #tpu.memory_space<vmem>>, vector<2x1xf32>
      %cst_29 = arith.constant 1.000000e-30 : f32
      %52 = vector.broadcast %cst_29 : f32 to vector<2x1xf32>
      %53 = arith.maximumf %51, %52 : vector<2x1xf32>
      %54 = tpu.reciprocal %53 {approx = true} : vector<2x1xf32> -> vector<2x1xf32>
      %c0_30 = arith.constant 0 : index
      %c0_31 = arith.constant 0 : index
      %55 = vector.load %arg8[%c0_30, %c0_31] : memref<2x32xf32, #tpu.memory_space<vmem>>, vector<2x32xf32>
      %56 = vector.broadcast %54 : vector<2x1xf32> to vector<2x32xf32>
      %57 = arith.mulf %55, %56 : vector<2x32xf32>
      %c0_32 = arith.constant 0 : index
      %c0_33 = arith.constant 0 : index
      %58 = vector.load %arg5[%c0_32, %c0_33] : memref<2x32xf32, #tpu.memory_space<vmem>>, vector<2x32xf32>
      tpu.vector_store %arg5[%c0_32, %c0_33], %57 {strides = array<i32>} : memref<2x32xf32, #tpu.memory_space<vmem>>, vector<2x32xf32>,
    } else {
    }
    return
  }
  func.func @transform_0(%arg0: i32, %arg1: i32) -> (i32, i32, i32) {
    %c0_i32 = arith.constant 0 : i32
    %c0_i32_0 = arith.constant 0 : i32
    %c0_i32_1 = arith.constant 0 : i32
    return %arg1, %c0_i32, %c0_i32_0 : i32, i32, i32
  }
  func.func @transform_1(%arg0: i32, %arg1: i32) -> (i32, i32) {
    %c0_i32 = arith.constant 0 : i32
    %c0_i32_0 = arith.constant 0 : i32
    return %arg1, %c0_i32 : i32, i32
  }
  func.func @transform_2(%arg0: i32, %arg1: i32) -> (i32, i32) {
    %c0_i32 = arith.constant 0 : i32
    %c0_i32_0 = arith.constant 0 : i32
    %c0_i32_1 = arith.constant 0 : i32
    return %c0_i32, %c0_i32_0 : i32, i32
  }
  func.func @transform_3(%arg0: i32, %arg1: i32) -> (i32, i32) {
    %c0_i32 = arith.constant 0 : i32
    %c0_i32_0 = arith.constant 0 : i32
    return %arg0, %c0_i32 : i32, i32
  }
}

</mosaic_0001>

<bundles_post_ra>
// kernel: attention_pooling.1
= control target key start
LH: loop header
LB: loop body
LE: loop exit
PB: predicated region body
PF: predicated region fallthrough
CT: control target
= control target key end

     0   :  { %8 = vsyncpa [#allocation6], 0  ;;  %s838_s0 = inlined_call_operand.vmem [shape: s32[2,1,8], index: 0, kind: input, shape index: {}]   ;;  %s839_s1 = inlined_call_operand.hbm [shape: f32[16,32], index: 1, kind: input, shape index: {}]   ;;  %s840_s2 = inlined_call_operand.vmem [shape: f32[1,32], index: 2, kind: input, shape index: {}]   ;;  %s841_s3 = inlined_call_operand.hbm [shape: f32[2,32], index: 3, kind: output, shape index: {}]  }
   0x1   :  { %10 = vsyncpa [#allocation6 + $0x1], 0 }
   0x2   :  { %11 = vsyncpa [#allocation7], 0  ;;  %s670_s12 = smov 0   ;;  %s672_s13 = smov 0  }
   0x3   :  { %s674_s14 = smov 0   ;;  %s676_s15 = smov 0  }
   0x4   :  { %s678_s16 = smov 0   ;;  %s680_s17 = smov 0  }
   0x5 LB: > { %s429_s18 = sadd.s32 4294967295, %s640_s17   ;;  %s26_s19 = sadd.s32 1, %s636_s16  ;;  %s640_s17 = sphi %s680_s17, %s17_s17   ;;  %s636_s16 = sphi %s678_s16, %s852_s16   ;;  %s632_s15 = sphi %s676_s15, %s851_s15   ;;  %s628_s14 = sphi %s674_s14, %s850_s14   ;;  %s624_s13 = sphi %s672_s13, %s849_s13   ;;  %s620_s12 = sphi %s670_s12, %s848_s12  }
   0x6   : > { %p27_p0 = scmp.ge.s32.totalorder %s26_s19, 2  ;;  %s62_s20 = sadd.s32 1, %s628_s14 }
   0x7   : > { %p69_p1 = scmp.ne.s32.totalorder %s628_s14, %s624_s13  ;;  %p70_p2 = scmp.eq.s32.totalorder %s640_s17, 0 }
   0x8   : > { %s854_s19 = smov (%p27_p0, %s26_s19), 0  ;;  %p75_p4 = scmp.ne.s32.totalorder %s624_s13, %s620_s12 }
   0x9   : > { %p706_p3 = por %p70_p2, %p69_p1  ;;  %s59_s22 = ssub.s32 %s636_s16, %s854_s19 }
   0xa   : > { %p76_p5 = scmp.eq.s32.totalorder %s429_s18, 0  ;;  %p60_p6 = scmp.eq.s32.totalorder %s59_s22, 0 }
   0xb   : > { %p463_p8 = scmp.lt.s32.totalorder %s640_s17, 2  ;;  %s155_s25 = sand.u32 1, %s628_s14  }
   0xc   : > { %p715_p7 = por %p76_p5, %p75_p4  ;;  %s433_s26 = sshll.u32 %s636_s16, 7 }
   0xd   : > { %s721_s24 = scalar_select %p60_p6, %s628_s14, %s62_s20  }
   0xe   : > { %s432_s27 = sshll.u32 %s155_s25, 3  ;;  %s728_s30 = scalar_lea.hbm %s839_s1, %s433_s26 }
   0xf   : > { %s159_s4 = scalar_lea.vmem [#allocation5], %s432_s27  ;;  %p732_p9 = pnand %p463_p8, %p706_p3 }
  0x10   : > { %s166_s5 = sshll.u32 %s159_s4, 4  ;;  %s156_s7 = scalar_lea.sflag [#allocation6], %s155_s25  ;;  %s736_s5 = int_to_ptr.vmem [resolvable:$true] %s166_s5 }
  0x11   : > { %s530_s8 = scalar_lea.hbm %s728_s30, 128  ;;  %p532_p13 = pneg %p732_p9 }
  0x12   : > { %p531_p12 = scmp.ne.s32.totalorder %s728_s30, %s530_s8  ;;  %s535_s11 = scalar_lea.hbm %s839_s1, 256 }
  0x13   : > { %p536_p2 = scmp.lt.u32.totalorder %s728_s30, %s839_s1  ;;  %p537_p3 = scmp.lt.u32.totalorder %s535_s11, %s530_s8 }
  0x14   : > { %p533_p0 = pnand %p532_p13, %p531_p12  ;;  %p539_p5 = scmp.lt.u32.totalorder %s530_s8, %s728_s30 }
  0x15   : > { %p538_p4 = por %p537_p3, %p536_p2 }
  0x16   : > { %p534_p1 = pneg %p533_p0 }
  0x17   : > { %p540_p6 = por %p539_p5, %p538_p4 }
  0x19   : > { %p541_p8 = pnand %p540_p6, %p534_p1 }
  0x1b   : > { %544 = shalt.err (!%p541_p8)
}
  0x1c   : > { %s545_s21 = scalar_lea.vmem %s736_s5, 128  ;;  %s642_s22 = smov [#allocation5]  }
  0x1d   : > { %p546_p12 = scmp.ne.s32.totalorder %s736_s5, %s545_s21  ;;  %s550_s25 = sshll.u32 %s642_s22, 4  ;;  %s551_s25 = int_to_ptr.vmem [resolvable:$false] %s550_s25 }
  0x1e   : > { %s552_s26 = scalar_lea.vmem %s551_s25, 256  ;;  %p553_p11 = scmp.lt.s32.totalorder %s736_s5, %s551_s25 }
  0x1f   : > { %p548_p0 = pnand %p546_p12, %p532_p13  ;;  %p554_p2 = scmp.lt.s32.totalorder %s552_s26, %s545_s21 }
  0x21   : > { %p549_p10 = pneg %p548_p0  ;;  %p555_p3 = por %p554_p2, %p553_p11 }
  0x23   : > { %p556_p4 = pnand %p555_p3, %p549_p10 }
  0x25   : > { %559 = shalt.err (!%p556_p4)
}
  0x26   : > { %462 = dma.hbm_to_vmem [thread:$0]  (!%p732_p9), %s728_s30, 128, %s736_s5, %s156_s7  }
  0x27   : > { %p845_p1 = scmp.lt.s32.totalorder %s640_s17, 3  ;;  %p846_p5 = scmp.ge.s32.totalorder %s640_s17, 1 }
  0x29   : > { %p172_p13 = pnand %p846_p5, %p845_p1 }
  0x2a   : > { %s177_s27 = sand.u32 (!%p172_p13), 1, %s624_s13  }
  0x2b   : > { %175 = sbr.rel (%p172_p13) target bundleno = 821 (0x335), region = 32  ;;  %s435_s28 = sshll.u32 (!%p172_p13), %s177_s27, 3 }
  0x2c   : > { %s178_s29 = scalar_lea.sflag (!%p172_p13), [#allocation6], %s177_s27  ;;  %s181_s4 = scalar_lea.vmem (!%p172_p13), [#allocation5], %s435_s28 }
  0x32   : > { %611 = dma.done.wait (%p715_p7), %s178_s29, 128  }
  0x33   : > { %613 = vsyncadd (%p715_p7), %s178_s29, 4294967168  ;;  %p202_p10 = scmp.lt.s32.totalorder %s632_s15, 1  ;;  %p436_p9 = scmp.ne.s32.totalorder %s632_s15, 0 }
  0x34   : > { %vm210_vm0 = vcmask (!%p436_p9), 1024   ;;  %vm213_vm1 = vcmask (!%p436_p9), 254976   ;;  %v643_v0 = vmov (!%p436_p9), -1e+30   ;;  %v644_v1 = vmov (!%p436_p9), 0.0  }
  0x35   : > { %s203_s6 = scalar_select %p202_p10, %s632_s15, 1 }
  0x36   : > { %209 = sbr.rel (%p436_p9) target bundleno = 61 (0x3d), region = 40  ;;  %211 = vst.msk [vmem:[#allocation2] sm:$0x3] (!%p436_p9), %vm210_vm0, %v643_v0  ;;  %212 = vst.msk [vmem:[#allocation3] sm:$0x3] (!%p436_p9), %vm210_vm0, %v644_v1 }
  0x37   : > { %s204_s7 = scalar_lea.vmem %s838_s0, %s203_s6  ;;  %214 = vst.msk [vmem:[#allocation4] sm:$0x3] (!%p436_p9), %vm213_vm1, %v644_v1 }
  0x3d PF: > { %v215_v2 = vld [vmem:[%s181_s4] sm:$0xff]  ;;  %v438_v3 = vld [vmem:[%s840_s2] ss:$0 sm:$0xff]  ;;  %vm235_vm2 = vcmask 261120   ;;  %v219_v6 = vlaneseq  ;;  %vm248_vm4 = vcmask 58368   ;;  %v645_v15 = vmov 0  }
  0x3e   : > { %v234_v4 = vmul.f32 %v438_v3, %v215_v2  ;;  %v437_v10 = vld [vmem:[%s204_s7] ss:$0 sm:$0xff]  ;;  %521 = vset.pattern.permute.xlu1 %v645_v15  ;;  %522 = vset.pattern.permute.xlu0 %v645_v15  ;;  %vm272_vm5 = vcmask 1024   ;;  %v646_v21 = vmov 0.0   ;;  %v282_v22 = vpack.c.bf16 %v215_v2, %v215_v2  ;;  %v266_v32 = vld [vmem:[#allocation3] sm:$0x3] }
  0x3f   : > { %v220_v7 = vshrl.u32 %v219_v6, 7  ;;  %v241_v8 = vand.u32 127, %v219_v6  ;;  %v252_v16 = vld [vmem:[#allocation2] sm:$0x3]  ;;  %447 = vmatprep.subr.bf16.mxu0 %v646_v21  ;;  %vm287_vm6 = vcmask 1043456   ;;  %vm647_vm7 = vmmov 0  }
  0x40   : > { %v236_v5 = vsel %vm235_vm2, %v234_v4, 0.0  ;;  %v289_v24 = vsel %vm287_vm6, %v282_v22, 0  ;;  %449 = vmatprep.mubr.msk.bf16.mxu0 %vm647_vm7, %v646_v21  ;;  %vm283_vm8 = vcmask 64512   ;;  %v274_v36 = vld [vmem:[#allocation4] sm:$0x3]  ;;  %vm332_vm9 = vcmask 254976  }
  0x41   : > { %237 = vadd.xlane.f32.xlu0 %v236_v5  ;;  %v244_v9 = vsub.s32 %v241_v8, %v220_v7  ;;  %vm227_vm3 = vcmp.eq.s32.totalorder %v220_v7, %v437_v10  ;;  %448 = vmatpush3.bf16.msra.mxu0 %v289_v24  ;;  %p440_p7 = scmp.ne.s32.totalorder %s632_s15, 1 }
  0x42   : > { %v648_v45 = vmov (!%p440_p7), 0  }
  0xce   : > { %v238_v11 = vpop.xlane.xlu0 %237 }
  0xcf   : > { %v245_v12 = vrot.slane %v238_v11, %v244_v9 }
  0xd1   : > { %v247_v13 = vsel %vm227_vm3, %v245_v12, -1e+30 }
  0xd2   : > { %v249_v14 = vsel %vm248_vm4, %v247_v13, -inf }
  0xd3   : > { %250 = vmax.xlane.f32.xlu0 %v249_v14 }
 0x160   : > { %v251_v17 = vpop.xlane.xlu0 %250 }
 0x161   : > { %v253_v18 = vmax.f32 %v252_v16, %v251_v17 }
 0x163   : > { %v254_v19 = vsub.f32 %v252_v16, %v253_v18  ;;  %334 = vst.msk [vmem:[#allocation2] sm:$0x3] %vm272_vm5, %v253_v18  ;;  %259 = vperm.xlu1 %521, %v253_v18  }
 0x165   : > { %v255_v20 = vmul.f32 1.442695, %v254_v19 }
 0x167   : > { %523 = vpow2.f32 %v255_v20 }
 0x171   : > { %v524_v23 = vpop.eup %523 }
 0x172   : > { %277 = vperm.xlu0 %522, %v524_v23   ;;  %v267_v33 = vmul.f32 %v524_v23, %v266_v32 }
 0x176   : > { %527 = vset.pattern.permute.xlu0 (!%p440_p7), %v648_v45 }
 0x1e2   : > { %v260_v25 = vpop.permute.xlu1 %259 }
 0x1e3   : > { %v262_v26 = vsub.f32 %v247_v13, %v260_v25 }
 0x1e5   : > { %v263_v27 = vmul.f32 1.442695, %v262_v26 }
 0x1e7   : > { %525 = vpow2.f32 %v263_v27 }
 0x1f1   : > { %v526_v28 = vpop.eup %525  ;;  %v278_v37 = vpop.permute.xlu0 %277 }
 0x1f2   : > { %v265_v29 = vsel %vm227_vm3, %v526_v28, 0.0  ;;  %v280_v38 = vmul.f32 %v278_v37, %v274_v36 }
 0x1f3   : > { %v268_v30 = vsel %vm248_vm4, %v265_v29, 0.0  ;;  %v281_v31 = vpack.c.bf16 %v265_v29, %v265_v29 }
 0x1f4   : > { %269 = vadd.xlane.f32.xlu1 %v268_v30 }
 0x1f5   : > { %450 = vmatmul.mubr.msk.bf16.vlgmr.msra.gmra.mrb[0].mxu0 %vm283_vm8, %v281_v31 }
 0x281   : > { %v270_v34 = vpop.xlane.xlu1 %269 }
 0x282   : > { %v271_v35 = vadd.f32 %v270_v34, %v267_v33 }
 0x284   : > { %273 = vst.msk [vmem:[#allocation3] sm:$0x3] %vm272_vm5, %v271_v35 }
 0x28b   : > { %v339_v44 = vld [vmem:[#allocation3] sm:$0x3] (!%p440_p7) }
 0x28c   : > { %v340_v46 = vmax.f32 (!%p440_p7), %v339_v44, 1e-30 }
 0x28e   : > { %528 = vrcp.f32 (!%p440_p7), %v340_v46 }
 0x298   : > { %v529_v47 = vpop.eup (!%p440_p7), %528 }
 0x299   : > { %345 = vperm.xlu0 (!%p440_p7), %527, %v529_v47  }
 0x2c5   : > { %338 = sbr.rel (%p440_p7) target bundleno = 796 (0x31c), region = 44 }
 0x2c8   : > { %v325_v39 = vpop.f32.mrb[0].mxu0 }
 0x2c9   : > { %v331_v40 = vadd.f32 %v325_v39, %v280_v38  ;;  %v451_v41 = vpop.f32.mrb[1].mxu0 }
 0x2ca   : > { %v328_v42 = vpop.f32.mrb[2].mxu0 }
 0x2cb   : > { %333 = vst.msk [vmem:[#allocation4] sm:$0x3] %vm332_vm9, %v331_v40  ;;  %v452_v43 = vpop.f32.mrb[3].mxu0 }
 0x2d2   : > { %v342_v48 = vld [vmem:[#allocation4] sm:$0x3] }
 0x318   : > { %v346_v49 = vpop.permute.xlu0 %345 }
 0x319   : > { %v348_v50 = vmul.f32 %v346_v49, %v342_v48 }
 0x31b   : > { %349 = vst.msk [vmem:[#allocation8] sm:$0x3] %vm332_vm9, %v348_v50 }
 0x31c PF: > { %p794_p11 = scmp.eq.s32.totalorder %s429_s18, 1  ;;  %s649_s15 = smov [#allocation8]  }
 0x31d   : > { %s359_s10 = sshll.u32 %s649_s15, 4  ;;  %s360_s10 = int_to_ptr.vmem [resolvable:$true] %s359_s10 }
 0x31e   : > { %s560_s11 = scalar_lea.vmem %s360_s10, 32  ;;  %p567_p0 = scmp.lt.s32.totalorder %s360_s10, %s360_s10 }
 0x31f   : > { %p561_p6 = scmp.ne.s32.totalorder %s360_s10, %s560_s11  ;;  %p568_p2 = scmp.lt.s32.totalorder %s560_s11, %s560_s11 }
 0x321   : > { %p562_p8 = pnand %p561_p6, %p794_p11  ;;  %p569_p3 = por %p568_p2, %p567_p0 }
 0x323   : > { %p563_p12 = pneg %p562_p8 }
 0x325   : > { %p570_p4 = pnand %p569_p3, %p563_p12 }
 0x327   : > { %573 = shalt.err (!%p570_p4)
}
 0x328   : > { %s574_s18 = scalar_lea.hbm %s841_s3, 32 }
 0x329   : > { %p575_p1 = scmp.ne.s32.totalorder %s841_s3, %s574_s18  ;;  %p580_p10 = scmp.lt.u32.totalorder %s574_s18, %s841_s3 }
 0x32b   : > { %p576_p5 = pnand %p575_p1, %p794_p11 }
 0x32d   : > { %p577_p13 = pneg %p576_p5 }
 0x32f   : > { %p582_p9 = pnand %p580_p10, %p577_p13 }
 0x331   : > { %585 = shalt.err (!%p582_p9)
}
 0x332   : > { %456 = dma.vmem_to_hbm [thread:$0]  (%p794_p11), %s360_s10, 32, %s841_s3, [#allocation7]  }
 0x333   : > { %615 = dma.done.wait (%p794_p11), [#allocation7], 32  }
 0x334   : > { %617 = vsyncadd (%p794_p11), [#allocation7], 4294967264 }
 0x335 PF: > { %s17_s17 = sadd.s32 1, %s640_s17   ;;  %s848_s12 = smov %s624_s13 }
 0x336   : > { %p14_p7 = scmp.ge.s32.totalorder %s17_s17, 4   ;;  %s849_s13 = smov %s628_s14 }
 0x337   : > { %s850_s14 = smov %s721_s24  ;;  %s851_s15 = smov %s636_s16 }
 0x338   : > { %s852_s16 = smov %s854_s19  ;;  %16 = sbr.rel (!%p14_p7) target bundleno = 5 (0x5), region = 81 }
 0x33f   :  { %372 = vsyncpa [#allocation6], 1 }
 0x340   :  { %374 = vsyncpa [#allocation6 + $0x1], 1 }
 0x341   :  { %375 = vsyncpa [#allocation7], 1 }
 0x342   :  { %377 = vsyncpa [#allocation7 + $0x1], 1 }

</bundles_post_ra>
